<compile_context>
chip_gen: v7x
topology: tpu7x:2x2x1
jax: 0.10.0
libtpu: 0.0.40
codegen_flags: <defaults>
</compile_context>

<pallas_src>
import jax
import jax.numpy as jnp
from jax import lax
from jax.experimental import pallas as pl
from jax.experimental.pallas import tpu as pltpu

_MIB = 1024 * 1024


def _ff_kernel(x_ref, w1_ref, b1_ref, w2_ref, b2_ref, g_ref, beta_ref,
               o_ref, acc_ref, xn_ref):
    # grid = (row tiles i, d_ff tiles k); k is a reduction into acc_ref.
    k = pl.program_id(1)

    @pl.when(k == 0)
    def _init():
        # ---- LayerNorm in f32, computed once per row tile ----
        # Two-pass variance (mean((x - mean)^2)): matches torch LayerNorm and
        # avoids catastrophic cancellation of E[x^2] - E[x]^2.
        x = x_ref[...].astype(jnp.float32)
        mean = jnp.mean(x, axis=-1, keepdims=True)
        xc = x - mean
        var = jnp.mean(xc * xc, axis=-1, keepdims=True)
        xn = xc * lax.rsqrt(var + 1e-5)
        xn = xn * g_ref[...] + beta_ref[...]
        # Stage normalized activations in bf16 for the MXU.
        xn_ref[...] = xn.astype(xn_ref.dtype)
        # Seed accumulator with the residual and the linear2 bias.
        acc_ref[...] = x + b2_ref[...]

    # ---- one d_ff chunk:  relu(xn @ W1[:, chunk] + b1[chunk]) @ W2[chunk, :]
    h = jnp.dot(xn_ref[...], w1_ref[...], preferred_element_type=jnp.float32)
    h = jnp.maximum(h + b1_ref[...], 0.0)
    acc_ref[...] += jnp.dot(h.astype(w2_ref.dtype), w2_ref[...],
                            preferred_element_type=jnp.float32)

    @pl.when(k == pl.num_programs(1) - 1)
    def _finalize():
        o_ref[...] = acc_ref[...].astype(o_ref.dtype)


def _round_up(x, m):
    return (x + m - 1) // m * m


def _vmem_capacity_bytes():
    try:
        return int(pltpu.get_tpu_info().vmem_capacity_bytes)
    except Exception:
        return 64 * _MIB  # conservative (v7x-sized) fallback


def _footprint_bytes(tm, tk, D, d_ff, weights_resident):
    """Estimated per-step VMEM footprint, including the compiler-managed
    (tm, tk) f32 intermediate and its bf16 copy."""
    wbuf = 1 if weights_resident else 2          # single- vs double-buffered
    return (
        wbuf * D * tk * 2                        # W1 block (bf16)
        + wbuf * tk * D * 2                      # W2 block (bf16)
        + wbuf * tk * 4                          # b1 block (f32)
        + 3 * D * 4                              # b2 / gamma / beta (Buffered(1))
        + 2 * tm * D * 4                         # x tile (double-buffered)
        + 2 * tm * D * 4                         # out tile (double-buffered)
        + tm * D * 4                             # acc scratch (f32)
        + tm * D * 2                             # xn scratch (bf16)
        + tm * tk * (4 + 2)                      # h (f32) + its bf16 cast
    )


def _select_config(N, D, d_ff):
    """Pick (tile_rows, tile_ff, weights_resident, vmem_capacity)."""
    cap = _vmem_capacity_bytes()
    budget = cap - 8 * _MIB                      # headroom for compiler internals

    n8 = _round_up(max(N, 1), 8)
    tm_candidates = sorted(
        {min(c, n8) for c in (1024, 512, 256, 128, 64, 32, 16, 8)}, reverse=True)

    # 1) Weight-resident regime: whole bf16 W1+W2 stay in VMEM across all row
    #    tiles (tile_ff = d_ff, grid-invariant weight blocks, single-buffered).
    for tm in tm_candidates:
        if _footprint_bytes(tm, d_ff, D, d_ff, True) <= budget:
            return tm, d_ff, True, cap

    # 2) Streaming regime: weights re-streamed per row tile.  Arithmetic
    #    intensity per streamed weight byte == tile_rows, so maximize tile_rows
    #    first, then take the largest d_ff chunk that still fits.
    tk_candidates = [t for t in (512, 256, 128) if d_ff % t == 0] or [d_ff]
    for tm in tm_candidates:
        for tk in tk_candidates:
            if _footprint_bytes(tm, tk, D, d_ff, False) <= budget:
                return tm, tk, False, cap

    raise ValueError(
        f"no (tile_rows, tile_ff) fits VMEM budget {budget} B "
        f"for d_model={D}, d_ff={d_ff}")


def transformer_ff_block(x, w1, b1, w2, b2, gamma, beta,
                         *, tile_rows=None, tile_ff=None):
    """Pre-norm transformer FF block.

    x: (batch, seq, d_model) float32.
    w1: (d_model, d_ff), w2: (d_ff, d_model) -- transposed vs. torch, expected
    to be stored in bf16 persistently (see init_params) so no per-call cast
    (and no extra HBM pass over the weights) is needed.
    NOTE: for best performance d_model and d_ff should be multiples of 128
    (lane-dense blocks); small test sizes work because blocks span full dims.
    """
    B, S, D = x.shape
    d_ff = w1.shape[1]
    N = B * S

    tm_auto, tk_auto, _, cap = _select_config(N, D, d_ff)
    if tile_rows is None:
        tile_rows = tm_auto
    if tile_ff is None:
        tile_ff = tk_auto
    resident = (tile_ff == d_ff)

    # v7x megacore: keep the "parallel" row grid >= 2 so both TCs get work.
    while tile_rows > 8 and _round_up(N, tile_rows) // tile_rows < 2:
        tile_rows = max(8, (tile_rows // 2) // 8 * 8)

    assert tile_rows % 8 == 0, "tile_rows must be a multiple of 8"
    assert d_ff % tile_ff == 0, "d_ff must be divisible by tile_ff"

    # Weights should already be bf16 (init_params); fall back to a cast with a
    # warning-comment cost if a caller passes f32.
    if w1.dtype != jnp.bfloat16:
        w1 = w1.astype(jnp.bfloat16)   # avoidable HBM pass; store bf16 instead
    if w2.dtype != jnp.bfloat16:
        w2 = w2.astype(jnp.bfloat16)

    b1_2 = b1.reshape(1, d_ff).astype(jnp.float32)
    b2_2 = b2.reshape(1, D).astype(jnp.float32)
    g_2 = gamma.reshape(1, D).astype(jnp.float32)
    beta_2 = beta.reshape(1, D).astype(jnp.float32)

    # Pad rows to a tile multiple (graceful handling of awkward N).
    n_pad = _round_up(N, tile_rows)
    x2 = x.reshape(N, D)
    if n_pad != N:
        x2 = jnp.pad(x2, ((0, n_pad - N), (0, 0)))

    grid = (n_pad // tile_rows, d_ff // tile_ff)

    # Explicit, generation-aware VMEM budget: footprint + headroom, capped at
    # physical capacity minus slack for compiler internal scratch.
    footprint = _footprint_bytes(tile_rows, tile_ff, D, d_ff, resident)
    vmem_limit = max(int(footprint * 1.3) + 4 * _MIB, 16 * _MIB)
    vmem_limit = min(vmem_limit, cap - 4 * _MIB)

    const_mode = pl.Buffered(1)  # single-buffer blocks whose index never changes

    if resident:
        # Grid-invariant weight blocks -> DMA'd once, held resident in VMEM.
        w1_spec = pl.BlockSpec((D, tile_ff), lambda i, k: (0, k),
                               pipeline_mode=const_mode)
        b1_spec = pl.BlockSpec((1, tile_ff), lambda i, k: (0, k),
                               pipeline_mode=const_mode)
        w2_spec = pl.BlockSpec((tile_ff, D), lambda i, k: (k, 0),
                               pipeline_mode=const_mode)
    else:
        w1_spec = pl.BlockSpec((D, tile_ff), lambda i, k: (0, k))
        b1_spec = pl.BlockSpec((1, tile_ff), lambda i, k: (0, k))
        w2_spec = pl.BlockSpec((tile_ff, D), lambda i, k: (k, 0))

    # Advisory cost estimate for XLA's scheduler around the custom call.
    n_row_tiles = grid[0]
    weight_bytes = 2 * D * d_ff * 2  # bf16 W1 + W2
    cost = pl.CostEstimate(
        flops=4 * n_pad * D * d_ff,                  # two matmuls
        transcendentals=n_pad,                       # one rsqrt per row
        bytes_accessed=(2 * n_pad * D * 4            # x in + out
                        + (weight_bytes if resident
                           else n_row_tiles * weight_bytes)
                        + d_ff * 4 + 3 * D * 4),
    )

    out = pl.pallas_call(
        _ff_kernel,
        out_shape=jax.ShapeDtypeStruct((n_pad, D), x.dtype),
        grid_spec=pltpu.PrefetchScalarGridSpec(
            num_scalar_prefetch=0,
            grid=grid,
            in_specs=[
                pl.BlockSpec((tile_rows, D), lambda i, k: (i, 0)),   # x tile
                w1_spec,                                             # W1 block
                b1_spec,                                             # b1 block
                w2_spec,                                             # W2 block
                pl.BlockSpec((1, D), lambda i, k: (0, 0),
                             pipeline_mode=const_mode),              # b2
                pl.BlockSpec((1, D), lambda i, k: (0, 0),
                             pipeline_mode=const_mode),              # gamma
                pl.BlockSpec((1, D), lambda i, k: (0, 0),
                             pipeline_mode=const_mode),              # beta
            ],
            out_specs=pl.BlockSpec((tile_rows, D), lambda i, k: (i, 0)),
            scratch_shapes=[
                pltpu.VMEM((tile_rows, D), jnp.float32),    # accumulator
                pltpu.VMEM((tile_rows, D), jnp.bfloat16),   # staged LN output
            ],
        ),
        compiler_params=pltpu.CompilerParams(
            dimension_semantics=("parallel", "arbitrary"),
            vmem_limit_bytes=vmem_limit,
        ),
        cost_estimate=cost,
    )(x2, w1, b1_2, w2, b2_2, g_2, beta_2)

    if n_pad != N:
        out = out[:N]
    return out.reshape(B, S, D)


def init_params(key, d_model, d_ff):
    k1, k2 = jax.random.split(key)
    # Matches torch init: linear{1,2}.weight.normal_(std=0.02), biases zero,
    # LayerNorm gamma=1 / beta=0.  Weights stored transposed (kernel computes
    # x @ W == x @ weight.T) and cast to bf16 ONCE here, so per-call wrappers
    # never re-cast them (no extra HBM pass over the weights).
    w1 = (0.02 * jax.random.normal(k1, (d_model, d_ff), dtype=jnp.float32)
          ).astype(jnp.bfloat16)
    b1 = jnp.zeros((d_ff,), dtype=jnp.float32)
    w2 = (0.02 * jax.random.normal(k2, (d_ff, d_model), dtype=jnp.float32)
          ).astype(jnp.bfloat16)
    b2 = jnp.zeros((d_model,), dtype=jnp.float32)
    gamma = jnp.ones((d_model,), dtype=jnp.float32)
    beta = jnp.zeros((d_model,), dtype=jnp.float32)
    return w1, b1, w2, b2, gamma, beta


def _reference(x, w1, b1, w2, b2, gamma, beta):
    w1 = w1.astype(jnp.float32)
    w2 = w2.astype(jnp.float32)
    mean = jnp.mean(x, axis=-1, keepdims=True)
    var = jnp.mean((x - mean) ** 2, axis=-1, keepdims=True)
    xn = (x - mean) / jnp.sqrt(var + 1e-5) * gamma + beta
    h = jnp.maximum(xn @ w1 + b1, 0.0)
    return h @ w2 + b2 + x


if __name__ == "__main__":
    key = jax.random.PRNGKey(0)
    k_x, k_p = jax.random.split(key)

    batch, seq, d_model, d_ff = 2, 8, 32, 64
    x = jax.random.normal(k_x, (batch, seq, d_model), dtype=jnp.float32)
    params = init_params(k_p, d_model, d_ff)

    out = transformer_ff_block(x, *params)
    out = jax.block_until_ready(out)

    ref = _reference(x, *params)
    assert out.shape == x.shape
    # bf16 matmul operands (f32 accumulation) -> slightly looser tolerance vs
    # the pure-f32 reference path.
    assert jnp.allclose(out, ref, atol=2e-2, rtol=2e-2), "mismatch vs reference"

    print("KERNEL_OK")
</pallas_src>

<mosaic_0001>
module attributes {stable_mosaic.version = 11 : i64} {
  func.func @_ff_kernel(%arg0: i32, %arg1: i32, %arg2: memref<8x32xf32, #tpu.memory_space<vmem>>, %arg3: memref<32x64xbf16, #tpu.memory_space<vmem>>, %arg4: memref<1x64xf32, #tpu.memory_space<vmem>>, %arg5: memref<64x32xbf16, #tpu.memory_space<vmem>>, %arg6: memref<1x32xf32, #tpu.memory_space<vmem>>, %arg7: memref<1x32xf32, #tpu.memory_space<vmem>>, %arg8: memref<1x32xf32, #tpu.memory_space<vmem>>, %arg9: memref<8x32xf32, #tpu.memory_space<vmem>>, %arg10: memref<8x32xf32, #tpu.memory_space<vmem>>, %arg11: memref<8x32xbf16, #tpu.memory_space<vmem>>) attributes {dimension_semantics = [#tpu.dimension_semantics<parallel>, #tpu.dimension_semantics<arbitrary>], iteration_bounds = array<i64: 2, 1>, scalar_prefetch = 0 : i64, scratch_operands = 2 : i64, tpu.core_type = #tpu.core_type<tc>, window_params = [{transform_indices = @transform_0, window_bounds = array<i64: 8, 32>}, {pipeline_mode = #tpu.pipeline_mode<synchronous>, transform_indices = @transform_1, window_bounds = array<i64: 32, 64>}, {pipeline_mode = #tpu.pipeline_mode<synchronous>, transform_indices = @transform_2, window_bounds = array<i64: 1, 64>}, {pipeline_mode = #tpu.pipeline_mode<synchronous>, transform_indices = @transform_3, window_bounds = array<i64: 64, 32>}, {pipeline_mode = #tpu.pipeline_mode<synchronous>, transform_indices = @transform_4, window_bounds = array<i64: 1, 32>}, {pipeline_mode = #tpu.pipeline_mode<synchronous>, transform_indices = @transform_5, window_bounds = array<i64: 1, 32>}, {pipeline_mode = #tpu.pipeline_mode<synchronous>, transform_indices = @transform_6, window_bounds = array<i64: 1, 32>}, {transform_indices = @transform_7, window_bounds = array<i64: 8, 32>}]} {
    %c0_i32 = arith.constant 0 : i32
    %0 = arith.cmpi eq, %arg1, %c0_i32 : i32
    %1 = arith.extui %0 : i1 to i32
    %c0_i32_0 = arith.constant 0 : i32
    %2 = arith.cmpi ne, %1, %c0_i32_0 : i32
    scf.if %2 {
      %c0_16 = arith.constant 0 : index
      %c0_17 = arith.constant 0 : index
      %20 = vector.load %arg2[%c0_16, %c0_17] : memref<8x32xf32, #tpu.memory_space<vmem>>, vector<8x32xf32>
      %cst_18 = arith.constant dense<0.000000e+00> : vector<8xf32>
      %21 = vector.multi_reduction <add>, %20, %cst_18 [1] : vector<8x32xf32> to vector<8xf32>
      %22 = vector.shape_cast %21 : vector<8xf32> to vector<8x1xf32>
      %cst_19 = arith.constant 3.200000e+01 : f32
      %23 = vector.broadcast %cst_19 : f32 to vector<8x1xf32>
      %24 = arith.divf %22, %23 : vector<8x1xf32>
      %25 = vector.broadcast %24 : vector<8x1xf32> to vector<8x32xf32>
      %26 = arith.subf %20, %25 : vector<8x32xf32>
      %27 = arith.mulf %26, %26 : vector<8x32xf32>
      %cst_20 = arith.constant dense<0.000000e+00> : vector<8xf32>
      %28 = vector.multi_reduction <add>, %27, %cst_20 [1] : vector<8x32xf32> to vector<8xf32>
      %29 = vector.shape_cast %28 : vector<8xf32> to vector<8x1xf32>
      %cst_21 = arith.constant 3.200000e+01 : f32
      %30 = vector.broadcast %cst_21 : f32 to vector<8x1xf32>
      %31 = arith.divf %29, %30 : vector<8x1xf32>
      %cst_22 = arith.constant 9.99999974E-6 : f32
      %32 = vector.broadcast %cst_22 : f32 to vector<8x1xf32>
      %33 = arith.addf %31, %32 : vector<8x1xf32>
      %34 = math.rsqrt %33 : vector<8x1xf32>
      %35 = vector.broadcast %34 : vector<8x1xf32> to vector<8x32xf32>
      %36 = arith.mulf %26, %35 : vector<8x32xf32>
      %c0_23 = arith.constant 0 : index
      %c0_24 = arith.constant 0 : index
      %37 = vector.load %arg7[%c0_23, %c0_24] : memref<1x32xf32, #tpu.memory_space<vmem>>, vector<1x32xf32>
      %38 = vector.broadcast %37 : vector<1x32xf32> to vector<8x32xf32>
      %39 = arith.mulf %36, %38 : vector<8x32xf32>
      %c0_25 = arith.constant 0 : index
      %c0_26 = arith.constant 0 : index
      %40 = vector.load %arg8[%c0_25, %c0_26] : memref<1x32xf32, #tpu.memory_space<vmem>>, vector<1x32xf32>
      %41 = vector.broadcast %40 : vector<1x32xf32> to vector<8x32xf32>
      %42 = arith.addf %39, %41 : vector<8x32xf32>
      %43 = arith.truncf %42 : vector<8x32xf32> to vector<8x32xbf16>
      %c0_27 = arith.constant 0 : index
      %c0_28 = arith.constant 0 : index
      %44 = vector.load %arg11[%c0_27, %c0_28] : memref<8x32xbf16, #tpu.memory_space<vmem>>, vector<8x32xbf16>
      tpu.vector_store %arg11[%c0_27, %c0_28], %43 {strides = array<i32>} : memref<8x32xbf16, #tpu.memory_space<vmem>>, vector<8x32xbf16>,
      %c0_29 = arith.constant 0 : index
      %c0_30 = arith.constant 0 : index
      %45 = vector.load %arg6[%c0_29, %c0_30] : memref<1x32xf32, #tpu.memory_space<vmem>>, vector<1x32xf32>
      %46 = vector.broadcast %45 : vector<1x32xf32> to vector<8x32xf32>
      %47 = arith.addf %20, %46 : vector<8x32xf32>
      %c0_31 = arith.constant 0 : index
      %c0_32 = arith.constant 0 : index
      %48 = vector.load %arg10[%c0_31, %c0_32] : memref<8x32xf32, #tpu.memory_space<vmem>>, vector<8x32xf32>
      tpu.vector_store %arg10[%c0_31, %c0_32], %47 {strides = array<i32>} : memref<8x32xf32, #tpu.memory_space<vmem>>, vector<8x32xf32>,
    } else {
    }
    %c0 = arith.constant 0 : index
    %c0_1 = arith.constant 0 : index
    %3 = vector.load %arg11[%c0, %c0_1] : memref<8x32xbf16, #tpu.memory_space<vmem>>, vector<8x32xbf16>
    %c0_2 = arith.constant 0 : index
    %c0_3 = arith.constant 0 : index
    %4 = vector.load %arg3[%c0_2, %c0_3] : memref<32x64xbf16, #tpu.memory_space<vmem>>, vector<32x64xbf16>
    %cst = arith.constant dense<0.000000e+00> : vector<8x64xf32>
    %5 = tpu.matmul %3, %4, %cst {dimension_numbers = #tpu.dot_dimension_numbers<[1], [0], [0], [1], [0, 0, 1, 1], [], []>} : vector<8x32xbf16>, vector<32x64xbf16>, vector<8x64xf32> -> vector<8x64xf32>
    %c0_4 = arith.constant 0 : index
    %c0_5 = arith.constant 0 : index
    %6 = vector.load %arg4[%c0_4, %c0_5] : memref<1x64xf32, #tpu.memory_space<vmem>>, vector<1x64xf32>
    %7 = vector.broadcast %6 : vector<1x64xf32> to vector<8x64xf32>
    %8 = arith.addf %5, %7 : vector<8x64xf32>
    %cst_6 = arith.constant 0.000000e+00 : f32
    %9 = vector.broadcast %cst_6 : f32 to vector<8x64xf32>
    %10 = arith.maximumf %8, %9 : vector<8x64xf32>
    %c0_7 = arith.constant 0 : index
    %c0_8 = arith.constant 0 : index
    %11 = vector.load %arg10[%c0_7, %c0_8] : memref<8x32xf32, #tpu.memory_space<vmem>>, vector<8x32xf32>
    %12 = arith.truncf %10 : vector<8x64xf32> to vector<8x64xbf16>
    %c0_9 = arith.constant 0 : index
    %c0_10 = arith.constant 0 : index
    %13 = vector.load %arg5[%c0_9, %c0_10] : memref<64x32xbf16, #tpu.memory_space<vmem>>, vector<64x32xbf16>
    %cst_11 = arith.constant dense<0.000000e+00> : vector<8x32xf32>
    %14 = tpu.matmul %12, %13, %cst_11 {dimension_numbers = #tpu.dot_dimension_numbers<[1], [0], [0], [1], [0, 0, 1, 1], [], []>} : vector<8x64xbf16>, vector<64x32xbf16>, vector<8x32xf32> -> vector<8x32xf32>
    %15 = arith.addf %11, %14 : vector<8x32xf32>
    %c0_12 = arith.constant 0 : index
    %c0_13 = arith.constant 0 : index
    %16 = vector.load %arg10[%c0_12, %c0_13] : memref<8x32xf32, #tpu.memory_space<vmem>>, vector<8x32xf32>
    tpu.vector_store %arg10[%c0_12, %c0_13], %15 {strides = array<i32>} : memref<8x32xf32, #tpu.memory_space<vmem>>, vector<8x32xf32>,
    %c0_i32_14 = arith.constant 0 : i32
    %17 = arith.cmpi eq, %arg1, %c0_i32_14 : i32
    %18 = arith.extui %17 : i1 to i32
    %c0_i32_15 = arith.constant 0 : i32
    %19 = arith.cmpi ne, %18, %c0_i32_15 : i32
    scf.if %19 {
      %c0_16 = arith.constant 0 : index
      %c0_17 = arith.constant 0 : index
      %20 = vector.load %arg10[%c0_16, %c0_17] : memref<8x32xf32, #tpu.memory_space<vmem>>, vector<8x32xf32>
      %c0_18 = arith.constant 0 : index
      %c0_19 = arith.constant 0 : index
      %21 = vector.load %arg9[%c0_18, %c0_19] : memref<8x32xf32, #tpu.memory_space<vmem>>, vector<8x32xf32>
      tpu.vector_store %arg9[%c0_18, %c0_19], %20 {strides = array<i32>} : memref<8x32xf32, #tpu.memory_space<vmem>>, vector<8x32xf32>,
    } else {
    }
    return
  }
  func.func @transform_0(%arg0: i32, %arg1: i32) -> (i32, i32) {
    %c0_i32 = arith.constant 0 : i32
    %c0_i32_0 = arith.constant 0 : i32
    return %arg0, %c0_i32 : i32, i32
  }
  func.func @transform_1(%arg0: i32, %arg1: i32) -> (i32, i32) {
    %c0_i32 = arith.constant 0 : i32
    %c0_i32_0 = arith.constant 0 : i32
    return %c0_i32, %arg1 : i32, i32
  }
  func.func @transform_2(%arg0: i32, %arg1: i32) -> (i32, i32) {
    %c0_i32 = arith.constant 0 : i32
    %c0_i32_0 = arith.constant 0 : i32
    return %c0_i32, %arg1 : i32, i32
  }
  func.func @transform_3(%arg0: i32, %arg1: i32) -> (i32, i32) {
    %c0_i32 = arith.constant 0 : i32
    %c0_i32_0 = arith.constant 0 : i32
    return %arg1, %c0_i32 : i32, i32
  }
  func.func @transform_4(%arg0: i32, %arg1: i32) -> (i32, i32) {
    %c0_i32 = arith.constant 0 : i32
    %c0_i32_0 = arith.constant 0 : i32
    %c0_i32_1 = arith.constant 0 : i32
    return %c0_i32, %c0_i32_0 : i32, i32
  }
  func.func @transform_5(%arg0: i32, %arg1: i32) -> (i32, i32) {
    %c0_i32 = arith.constant 0 : i32
    %c0_i32_0 = arith.constant 0 : i32
    %c0_i32_1 = arith.constant 0 : i32
    return %c0_i32, %c0_i32_0 : i32, i32
  }
  func.func @transform_6(%arg0: i32, %arg1: i32) -> (i32, i32) {
    %c0_i32 = arith.constant 0 : i32
    %c0_i32_0 = arith.constant 0 : i32
    %c0_i32_1 = arith.constant 0 : i32
    return %c0_i32, %c0_i32_0 : i32, i32
  }
  func.func @transform_7(%arg0: i32, %arg1: i32) -> (i32, i32) {
    %c0_i32 = arith.constant 0 : i32
    %c0_i32_0 = arith.constant 0 : i32
    return %arg0, %c0_i32 : i32, i32
  }
}

</mosaic_0001>

<bundles_post_ra>
// kernel: tpu_custom_call.1
= control target key start
LH: loop header
LB: loop body
LE: loop exit
PB: predicated region body
PF: predicated region fallthrough
CT: control target
= control target key end

     0   :  { %12 = vsyncpa [#allocation5], 0  ;;  %s1055_s0 = inlined_call_operand.vmem [shape: f32[16,32], index: 0, kind: input, shape index: {}]   ;;  %s1056_s1 = inlined_call_operand.vmem [shape: bf16[32,64], index: 1, kind: input, shape index: {}]   ;;  %s1057_s2 = inlined_call_operand.vmem [shape: f32[1,64], index: 2, kind: input, shape index: {}]   ;;  %s1058_s3 = inlined_call_operand.vmem [shape: bf16[64,32], index: 3, kind: input, shape index: {}]   ;;  %s1059_s4 = inlined_call_operand.vmem [shape: f32[1,32], index: 4, kind: input, shape index: {}]   ;;  %s1060_s5 = inlined_call_operand.vmem [shape: f32[1,32], index: 5, kind: input, shape index: {}]   ;;  %s1061_s6 = inlined_call_operand.vmem [shape: f32[1,32], index: 6, kind: input, shape index: {}]   ;;  %s1062_s7 = inlined_call_operand.hbm [shape: f32[16,32], index: 7, kind: output, shape index: {}]  }
   0x1   :  { %14 = vsyncpa [#allocation5 + $0x1], 0  ;;  %s907_s24 = smov 0   ;;  %s909_s25 = smov 0  }
   0x2   :  { %s911_s26 = smov 0   ;;  %s913_s27 = smov 0  }
   0x3   :  { %s915_s28 = smov 0   ;;  %s917_s29 = smov 0  }
   0x4 LB: > { %s665_s30 = sadd.s32 4294967295, %s862_s29   ;;  %s666_s8 = sadd.s32 4294967294, %s862_s29   ;;  %s862_s29 = sphi %s917_s29, %s20_s29   ;;  %s858_s28 = sphi %s915_s28, %s1069_s28   ;;  %s854_s27 = sphi %s913_s27, %s1068_s27   ;;  %s850_s26 = sphi %s911_s26, %s1067_s26   ;;  %s846_s25 = sphi %s909_s25, %s1066_s25   ;;  %s842_s24 = sphi %s907_s24, %s1065_s24  }
   0x5   : > { %s32_s9 = sadd.s32 1, %s858_s28  ;;  %s206_s10 = sadd.s32 1, %s850_s26 }
   0x6   : > { %p34_p0 = scmp.ge.s32.totalorder %s32_s9, 2  ;;  %p216_p1 = scmp.ne.s32.totalorder %s850_s26, %s846_s25 }
   0x7   : > { %p217_p2 = scmp.eq.s32.totalorder %s665_s30, 1  ;;  %p222_p3 = scmp.ne.s32.totalorder %s846_s25, %s842_s24 }
   0x8   : > { %s1071_s9 = smov (%p34_p0, %s32_s9), 0  ;;  %p223_p5 = scmp.eq.s32.totalorder %s666_s8, 1 }
   0x9   : > { %p947_p4 = por %p217_p2, %p216_p1  ;;  %s203_s12 = ssub.s32 %s858_s28, %s1071_s9 }
   0xa   : > { %p672_p6 = scmp.ge.s32.totalorder %s862_s29, 1  ;;  %p204_p7 = scmp.eq.s32.totalorder %s203_s12, 0 }
   0xb   : > { %p954_p8 = por %p223_p5, %p222_p3  ;;  %p279_p9 = scmp.lt.s32.totalorder %s862_s29, 3 }
   0xc   : > { %s960_s14 = scalar_select %p204_p7, %s850_s26, %s206_s10  }
   0xd   : > { %p280_p10 = pnand %p672_p6, %p279_p9 }
   0xe   : > { %p322_p11 = scmp.lt.s32.totalorder (!%p280_p10), %s854_s27, 1  ;;  %v677_v0 = vld [vmem:[%s1059_s4] ss:$0 sm:$0xff] (!%p280_p10)  ;;  %vm345_vm0 = vcmask (!%p280_p10), 261120   ;;  %v864_v10 = vmov (!%p280_p10), 0.0   ;;  %v777_v11 = vld [vmem:[%s1056_s1 + $0x8] sm:$0xff] (!%p280_p10)  }
   0xf   : > { %283 = sbr.rel (%p280_p10) target bundleno = 804 (0x324), region = 48  ;;  %v776_v9 = vld [vmem:[%s1056_s1] sm:$0xff] (!%p280_p10)   ;;  %699 = vmatprep.subr.bf16.mxu0 (!%p280_p10), %v864_v10  ;;  %707 = vmatprep.subr.bf16.mxu1 (!%p280_p10), %v864_v10  ;;  %vm865_vm1 = vmmov (!%p280_p10), 0   ;;  %v779_v13 = vld [vmem:[%s1058_s3 + $0x8] sm:$0xff] (!%p280_p10)   ;;  %vm377_vm2 = vcmask (!%p280_p10), 257024   ;;  %v780_v25 = vld [vmem:[%s1058_s3 + $0x10] sm:$0xff] (!%p280_p10)  }
  0x10   : > { %700 = vmatpush3.bf16.msra.mxu0 (!%p280_p10), %v776_v9  ;;  %703 = vmatprep.mubr.msk.bf16.mxu0 (!%p280_p10), %vm865_vm1, %v864_v10  ;;  %v778_v12 = vld [vmem:[%s1058_s3] sm:$0xff] (!%p280_p10)   ;;  %v781_v26 = vld [vmem:[%s1058_s3 + $0x18] sm:$0xff] (!%p280_p10)   ;;  %vm491_vm3 = vcmask (!%p280_p10), 523264   ;;  %s319_s12 = sand.u32 (!%p280_p10), 1, %s846_s25   ;;  %s688_s16 = sshll.u32 (!%p280_p10), %s854_s27, 7 }
  0x11   : > { %701 = vmatprep.subr.bf16.mxu0 (!%p280_p10), %v864_v10  ;;  %715 = vmatprep.mubr.msk.bf16.mxu1 (!%p280_p10), %vm865_vm1, %v864_v10  ;;  %v675_v18 = vld [vmem:[%s1060_s5] ss:$0 sm:$0xff] (!%p280_p10)  ;;  %s543_s22 = scalar_lea.sflag (!%p280_p10), [#allocation5], %s319_s12 }
  0x12   : > { %708 = vmatpush3.bf16.msra.mxu1 (!%p280_p10), %v778_v12  ;;  %v676_v20 = vld [vmem:[%s1061_s6] ss:$0 sm:$0xff] (!%p280_p10) }
  0x13   : > { %709 = vmatprep.subr.bf16.mxu1 (!%p280_p10), %v864_v10  ;;  %v678_v27 = vld [vmem:[%s1057_s2] ss:$0 sm:$0xff] (!%p280_p10) }
  0x14   : > { %702 = vmatpush3.bf16.msra.mxu0 (!%p280_p10), %v777_v11 }
  0x16   : > { %s323_s15 = scalar_select %p322_p11, %s854_s27, 1  ;;  %710 = vmatpush3.bf16.msra.mxu1 %v779_v13 }
  0x17   : > { %711 = vmatprep.subr.bf16.mxu1 %v864_v10  ;;  %s866_s27 = smov [#allocation4]  }
  0x18   : > { %s674_s18 = sshll.u32 %s323_s15, 3  ;;  %s673_s15 = sshll.u32 %s319_s12, 3 }
  0x19   : > { %s325_s21 = scalar_lea.vmem %s1055_s0, %s674_s18  ;;  %s321_s17 = scalar_lea.vmem [#allocation4], %s673_s15 }
  0x1a   : > { %v344_v1 = vld [vmem:[%s325_s21] sm:$0xff]  ;;  %712 = vmatpush3.bf16.msra.mxu1 %v780_v25  ;;  %s556_s18 = sshll.u32 %s321_s17, 4  ;;  %s1007_s21 = scalar_lea.hbm %s1062_s7, %s688_s16  ;;  %s1009_s18 = int_to_ptr.vmem [resolvable:$true] %s556_s18 }
  0x1b   : > { %v346_v2 = vsel %vm345_vm0, %v344_v1, 0.0  ;;  %v386_v3 = vadd.f32 %v677_v0, %v344_v1  ;;  %713 = vmatprep.subr.bf16.mxu1 %v864_v10  ;;  %s784_s23 = scalar_lea.vmem %s1009_s18, 128  ;;  %s788_s30 = sshll.u32 %s866_s27, 4  ;;  %s789_s30 = int_to_ptr.vmem [resolvable:$false] %s788_s30 }
  0x1c   : > { %347 = vadd.xlane.f32.xlu0 %v346_v2  ;;  %p785_p12 = scmp.ne.s32.totalorder %s1009_s18, %s784_s23  ;;  %s790_s8 = scalar_lea.vmem %s789_s30, 256 }
  0x1d   : > { %387 = vst.msk [vmem:[#allocation2] sm:$0xff] %vm345_vm0, %v386_v3  ;;  %p791_p1 = scmp.lt.s32.totalorder %s1009_s18, %s789_s30  ;;  %p792_p2 = scmp.lt.s32.totalorder %s790_s8, %s784_s23 }
  0x1e   : > { %714 = vmatpush3.bf16.msra.mxu1 %v781_v26  ;;  %p786_p13 = pnand %p785_p12, %p947_p4 }
  0x1f   : > { %p793_p3 = por %p792_p2, %p791_p1 }
  0x20   : > { %p787_p0 = pneg %p786_p13 }
  0x22   : > { %p794_p5 = pnand %p793_p3, %p787_p0 }
  0x24   : > { %v457_v35 = vld [vmem:[#allocation2] sm:$0xff] }
  0xa9   : > { %v348_v4 = vpop.xlane.xlu0 %347 }
  0xaa   : > { %v350_v5 = vmul.f32 0.03125, %v348_v4 }
  0xac   : > { %v351_v6 = vsub.f32 %v344_v1, %v350_v5 }
  0xae   : > { %v352_v7 = vmul.f32 %v351_v6, %v351_v6 }
  0xb0   : > { %v353_v8 = vsel %vm345_vm0, %v352_v7, 0.0 }
  0xb1   : > { %354 = vadd.xlane.f32.xlu0 %v353_v8 }
 0x13e   : > { %v355_v14 = vpop.xlane.xlu0 %354 }
 0x13f   : > { %v356_v15 = vmul.f32 0.03125, %v355_v14 }
 0x141   : > { %v357_v16 = vadd.f32 1e-05, %v356_v15 }
 0x143   : > { %782 = vrsqrt.f32 %v357_v16 }
 0x14d   : > { %v783_v17 = vpop.eup %782 }
 0x14e   : > { %v359_v19 = vmul.f32 %v783_v17, %v351_v6 }
 0x150   : > { %v367_v21 = vmul.f32 %v675_v18, %v359_v19 }
 0x152   : > { %v375_v22 = vadd.f32 %v676_v20, %v367_v21 }
 0x154   : > { %v376_v23 = vpack.c.bf16 %v375_v22, %v375_v22 }
 0x156   : > { %378 = vst.msk [vmem:[#allocation3] sm:$0xf] %vm377_vm2, %v376_v23 }
 0x15d   : > { %v388_v24 = vld [vmem:[#allocation3] sm:$0xf] }
 0x15e   : > { %704 = vmatmul.mubr.msk.bf16.vlgmr.msra.gmra.mrb[0].mxu0 %vm345_vm0, %v388_v24 }
 0x231   : > { %v450_v28 = vpop.f32.mrb[0].mxu0 }
 0x232   : > { %v451_v29 = vadd.f32 %v678_v27, %v450_v28  ;;  %v705_v30 = vpop.f32.mrb[1].mxu0 }
 0x233   : > { %v453_v31 = vpop.f32.mrb[2].mxu0 }
 0x234   : > { %v456_v32 = vmax.f32 %v451_v29, 0.0  ;;  %v706_v33 = vpop.f32.mrb[3].mxu0 }
 0x236   : > { %v458_v34 = vpack.c.bf16 %v456_v32, %v456_v32 }
 0x238   : > { %716 = vmatmul.mubr.msk.bf16.vlgmr.msra.gmra.mrb[0].mxu1 %vm491_vm3, %v458_v34 }
 0x30b   : > { %v529_v36 = vpop.f32.mrb[0].mxu1 }
 0x30c   : > { %v535_v37 = vadd.f32 %v529_v36, %v457_v35  ;;  %v717_v38 = vpop.f32.mrb[1].mxu1 }
 0x30d   : > { %v532_v39 = vpop.f32.mrb[2].mxu1 }
 0x30e   : > { %536 = vst.msk [vmem:[#allocation2] sm:$0xff] %vm345_vm0, %v535_v37  ;;  %v718_v40 = vpop.f32.mrb[3].mxu1 }
 0x315   : > { %v540_v41 = vld [vmem:[#allocation2] sm:$0xff] }
 0x316   : > { %541 = vst.msk [vmem:[%s321_s17] sm:$0xff] %vm345_vm0, %v540_v41 }
 0x317   : > { %797 = shalt.err (!%p794_p5)
}
 0x318   : > { %s798_s10 = scalar_lea.hbm %s1007_s21, 128  ;;  %s802_s16 = scalar_lea.hbm %s1062_s7, 256 }
 0x319   : > { %p799_p6 = scmp.ne.s32.totalorder %s1007_s21, %s798_s10  ;;  %p803_p10 = scmp.lt.u32.totalorder %s1007_s21, %s1062_s7 }
 0x31a   : > { %p804_p11 = scmp.lt.u32.totalorder %s802_s16, %s798_s10  ;;  %p806_p13 = scmp.lt.u32.totalorder %s798_s10, %s1007_s21 }
 0x31b   : > { %p800_p7 = pnand %p799_p6, %p947_p4 }
 0x31c   : > { %p805_p12 = por %p804_p11, %p803_p10 }
 0x31d   : > { %p801_p9 = pneg %p800_p7 }
 0x31e   : > { %p807_p0 = por %p806_p13, %p805_p12 }
 0x320   : > { %p808_p1 = pnand %p807_p0, %p801_p9 }
 0x322   : > { %811 = shalt.err (!%p808_p1)
}
 0x323   : > { %719 = dma.vmem_to_hbm [thread:$0]  (%p947_p4), %s1009_s18, 128, %s1007_s21, %s543_s22  }
 0x324 PF: > { %p725_p2 = scmp.ge.s32.totalorder %s862_s29, 2  ;;  %s568_s20 = sand.u32 1, %s842_s24  }
 0x325   : > { %s569_s23 = scalar_lea.sflag [#allocation5], %s568_s20 }
 0x326   : > { %p722_p3 = pnand %p725_p2, %p954_p8 }
 0x328   : > { %837 = dma.done.wait (!%p722_p3), %s569_s23, 128  }
 0x329   : > { %839 = vsyncadd (!%p722_p3), %s569_s23, 4294967168  ;;  %s20_s29 = sadd.s32 1, %s862_s29   ;;  %s1065_s24 = smov %s846_s25 }
 0x32a   : > { %p17_p5 = scmp.ge.s32.totalorder %s20_s29, 4   ;;  %s1066_s25 = smov %s850_s26 }
 0x32b   : > { %s1067_s26 = smov %s960_s14  ;;  %s1068_s27 = smov %s858_s28 }
 0x32c   : > { %s1069_s28 = smov %s1071_s9  ;;  %19 = sbr.rel (!%p17_p5) target bundleno = 4 (0x4), region = 100 }
 0x333   :  { %574 = vsyncpa [#allocation5], 1 }
 0x334   :  { %576 = vsyncpa [#allocation5 + $0x1], 1 }

</bundles_post_ra>
